<compile_context>
chip_gen: v6e
topology: v6e:2x2x1
jax: 0.10.0
libtpu: 0.0.40
codegen_flags: <defaults>
</compile_context>

<pallas_src>
import functools

import jax
import jax.numpy as jnp
from jax import lax
from jax.experimental import pallas as pl
from jax.experimental.pallas import tpu as pltpu


# ---------------------------------------------------------------------------
# Kernel
# ---------------------------------------------------------------------------
def _fused_double_conv_kernel(x_ref, w1_ref, b1_ref, w2_ref, b2_ref, out_ref,
                              *, compute_dtype):
    """Fused conv3x3(pad=1)+ReLU -> conv3x3(pad=1)+ReLU for one batch element.

    x_ref:   (1, H, W*Cin)             lane-packed input
    w*_ref:  (3, W*Cin_l, W*Cout_l)    banded per-kh weight matrices
    b*_ref:  (1, W*Cout_l)             bias tiled across W
    out_ref: (1, H, W*Cout)            lane-packed output
    """
    H = out_ref.shape[1]

    # (H, H) sub/super-diagonal shift matrices.  Left-multiplying by them
    # shifts rows down/up by one with zero fill -- this realises the kh=0/2
    # taps of the 3x3 stencil (including zero padding along H) as tiny MXU
    # matmuls instead of sublane-relayout slices.
    r = lax.broadcasted_iota(jnp.int32, (H, H), 0)
    c = lax.broadcasted_iota(jnp.int32, (H, H), 1)
    shift_down = (c == r - 1).astype(compute_dtype)   # row h <- row h-1
    shift_up = (c == r + 1).astype(compute_dtype)     # row h <- row h+1

    def conv3x3_relu(x, w_ref, b_ref):
        x = x.astype(compute_dtype)                    # MXU input dtype
        # Row-shifted copies of the input (zero-filled at the borders).
        xd = jnp.dot(shift_down, x, preferred_element_type=jnp.float32)
        xu = jnp.dot(shift_up, x, preferred_element_type=jnp.float32)
        # Three banded matmuls: kw taps + channels folded into K = W*Cin.
        acc = jnp.dot(xd.astype(compute_dtype), w_ref[0],
                      preferred_element_type=jnp.float32)
        acc = acc + jnp.dot(x, w_ref[1], preferred_element_type=jnp.float32)
        acc = acc + jnp.dot(xu.astype(compute_dtype), w_ref[2],
                            preferred_element_type=jnp.float32)
        acc = acc + b_ref[...].astype(jnp.float32)     # (1, W*Cout) broadcast
        return jnp.maximum(acc, 0.0)                   # ReLU

    h1 = conv3x3_relu(x_ref[0], w1_ref, b1_ref)        # stays in VMEM/vregs
    h2 = conv3x3_relu(h1, w2_ref, b2_ref)
    out_ref[0] = h2.astype(out_ref.dtype)


def _fused_double_conv_packed(x_packed, w1b, b1t, w2b, b2t, *, compute_dtype):
    N, H, WCin = x_packed.shape
    WCmid = w1b.shape[-1]
    WCout = w2b.shape[-1]
    kernel = functools.partial(_fused_double_conv_kernel,
                               compute_dtype=compute_dtype)
    return pl.pallas_call(
        kernel,
        out_shape=jax.ShapeDtypeStruct((N, H, WCout), jnp.float32),
        grid_spec=pltpu.PrefetchScalarGridSpec(
            num_scalar_prefetch=0,
            grid=(N,),
            in_specs=[
                pl.BlockSpec((1, H, WCin), lambda n: (n, 0, 0)),
                pl.BlockSpec((3, WCin, WCmid), lambda n: (0, 0, 0)),
                pl.BlockSpec((1, WCmid), lambda n: (0, 0)),
                pl.BlockSpec((3, WCmid, WCout), lambda n: (0, 0, 0)),
                pl.BlockSpec((1, WCout), lambda n: (0, 0)),
            ],
            out_specs=pl.BlockSpec((1, H, WCout), lambda n: (n, 0, 0)),
        ),
        compiler_params=pltpu.CompilerParams(
            dimension_semantics=("parallel",)),
    )(x_packed, w1b, b1t, w2b, b2t)


# ---------------------------------------------------------------------------
# Parameter packing (pure JAX, one-time, tiny)
# ---------------------------------------------------------------------------
def _banded_conv_weights(w_hwio, width):
    """(3, 3, Cin, Cout) HWIO -> (3, W*Cin, W*Cout) banded per-kh matrices.

    band[kh, s*Cin + ci, w*Cout + co] = w_hwio[kh, kw, ci, co]  for s = w+kw-1
    (out-of-range s omitted => zero padding along W is built in).
    """
    cin, cout = w_hwio.shape[2], w_hwio.shape[3]
    w_pos = jnp.arange(width)
    kw_pos = jnp.arange(3)
    src = w_pos[None, :] + kw_pos[:, None] - 1            # (3, W): s = w+kw-1
    sel = (src[:, None, :] == w_pos[None, :, None])       # (kw, s, w)
    sel = sel.astype(w_hwio.dtype)
    band = jnp.einsum("ksw,hkio->hsiwo", sel, w_hwio)     # (kh, s, ci, w, co)
    return band.reshape(3, width * cin, width * cout)


def _tiled_bias(b, width):
    return jnp.tile(b, width).reshape(1, width * b.shape[0])


def pack_params(params, width, compute_dtype=jnp.float32):
    w1, b1, w2, b2 = params
    w1b = _banded_conv_weights(w1, width).astype(compute_dtype)
    w2b = _banded_conv_weights(w2, width).astype(compute_dtype)
    b1t = _tiled_bias(b1, width).astype(jnp.float32)
    b2t = _tiled_bias(b2, width).astype(jnp.float32)
    return w1b, b1t, w2b, b2t


# ---------------------------------------------------------------------------
# Public wrapper (NCHW in / NCHW out, matching the PyTorch module).
# If the caller can work in NHWC / packed layout, the two transposes below
# can be dropped entirely.
# ---------------------------------------------------------------------------
def net_conv_block(x_nchw, params, *, compute_dtype=jnp.float32):
    n, cin, h, w = x_nchw.shape
    cout = params[3].shape[0]
    w1b, b1t, w2b, b2t = pack_params(params, w, compute_dtype)
    # NCHW -> NHWC -> (N, H, W*Cin): the last reshape is a free (contiguous)
    # view, giving a lane-packed activation layout.
    x_packed = jnp.transpose(x_nchw, (0, 2, 3, 1)).reshape(n, h, w * cin)
    x_packed = x_packed.astype(compute_dtype)
    out_packed = _fused_double_conv_packed(
        x_packed, w1b, b1t, w2b, b2t, compute_dtype=compute_dtype)
    out = out_packed.reshape(n, h, w, cout)
    return jnp.transpose(out, (0, 3, 1, 2))


def init_params(key, in_size, out_size):
    """Shapes/init match nn.Conv2d(in, out, 3, padding=1) twice (HWIO layout)."""
    k1, k2, k3, k4 = jax.random.split(key, 4)
    fan1 = in_size * 3 * 3
    fan2 = out_size * 3 * 3
    bound1 = 1.0 / jnp.sqrt(fan1)
    bound2 = 1.0 / jnp.sqrt(fan2)
    w1 = jax.random.uniform(k1, (3, 3, in_size, out_size), jnp.float32,
                            -bound1, bound1)
    b1 = jax.random.uniform(k2, (out_size,), jnp.float32, -bound1, bound1)
    w2 = jax.random.uniform(k3, (3, 3, out_size, out_size), jnp.float32,
                            -bound2, bound2)
    b2 = jax.random.uniform(k4, (out_size,), jnp.float32, -bound2, bound2)
    return w1, b1, w2, b2


def _reference(x_nchw, params):
    """Pure-JAX reference using lax.conv_general_dilated (NCHW, OIHW)."""
    w1, b1, w2, b2 = params
    w1_oihw = jnp.transpose(w1, (3, 2, 0, 1))
    w2_oihw = jnp.transpose(w2, (3, 2, 0, 1))

    def conv(x, w, b):
        y = lax.conv_general_dilated(
            x, w, window_strides=(1, 1), padding=((1, 1), (1, 1)),
            dimension_numbers=("NCHW", "OIHW", "NCHW"))
        return jnp.maximum(y + b[None, :, None, None], 0.0)

    out = conv(x_nchw, w1_oihw, b1)
    out = conv(out, w2_oihw, b2)
    return out


if __name__ == "__main__":
    key = jax.random.PRNGKey(0)
    k_x, k_p = jax.random.split(key)

    N, Cin, Cout, H, W = 2, 4, 8, 16, 16
    x = jax.random.normal(k_x, (N, Cin, H, W), dtype=jnp.float32)
    params = init_params(k_p, Cin, Cout)

    # f32 MXU-input path (default).
    out = jax.block_until_ready(net_conv_block(x, params))
    ref = _reference(x, params)
    assert out.shape == (N, Cout, H, W)
    assert jnp.allclose(out, ref, atol=1e-3, rtol=1e-3), "mismatch (f32 path)"

    # bf16 MXU-input path (f32 accumulation) -- looser tolerance.
    out_bf16 = jax.block_until_ready(
        net_conv_block(x, params, compute_dtype=jnp.bfloat16))
    assert float(jnp.max(jnp.abs(out_bf16 - ref))) < 1e-1, "mismatch (bf16 path)"

    print("KERNEL_OK")
</pallas_src>

<mosaic_0001>
module attributes {stable_mosaic.version = 11 : i64} {
  func.func @_fused_double_conv_kernel(%arg0: i32, %arg1: memref<1x16x64xf32, #tpu.memory_space<vmem>>, %arg2: memref<3x64x128xf32, #tpu.memory_space<vmem>>, %arg3: memref<1x128xf32, #tpu.memory_space<vmem>>, %arg4: memref<3x128x128xf32, #tpu.memory_space<vmem>>, %arg5: memref<1x128xf32, #tpu.memory_space<vmem>>, %arg6: memref<1x16x128xf32, #tpu.memory_space<vmem>>) attributes {dimension_semantics = [#tpu.dimension_semantics<parallel>], iteration_bounds = array<i64: 2>, scalar_prefetch = 0 : i64, scratch_operands = 0 : i64, tpu.core_type = #tpu.core_type<tc>, window_params = [{transform_indices = @transform_0, window_bounds = array<i64: 1, 16, 64>}, {pipeline_mode = #tpu.pipeline_mode<synchronous>, transform_indices = @transform_1, window_bounds = array<i64: 3, 64, 128>}, {pipeline_mode = #tpu.pipeline_mode<synchronous>, transform_indices = @transform_2, window_bounds = array<i64: 1, 128>}, {pipeline_mode = #tpu.pipeline_mode<synchronous>, transform_indices = @transform_3, window_bounds = array<i64: 3, 128, 128>}, {pipeline_mode = #tpu.pipeline_mode<synchronous>, transform_indices = @transform_4, window_bounds = array<i64: 1, 128>}, {transform_indices = @transform_5, window_bounds = array<i64: 1, 16, 128>}]} {
    %0 = tpu.iota {dimensions = array<i32: 0>} : vector<16x16xi32>
    %1 = tpu.iota {dimensions = array<i32: 1>} : vector<16x16xi32>
    %c1_i32 = arith.constant 1 : i32
    %2 = vector.broadcast %c1_i32 : i32 to vector<16x16xi32>
    %3 = arith.subi %0, %2 : vector<16x16xi32>
    %4 = arith.cmpi eq, %1, %3 : vector<16x16xi32>
    %5 = arith.extui %4 : vector<16x16xi1> to vector<16x16xi32>
    %6 = arith.sitofp %5 : vector<16x16xi32> to vector<16x16xf32>
    %c1_i32_0 = arith.constant 1 : i32
    %7 = vector.broadcast %c1_i32_0 : i32 to vector<16x16xi32>
    %8 = arith.addi %0, %7 : vector<16x16xi32>
    %9 = arith.cmpi eq, %1, %8 : vector<16x16xi32>
    %10 = arith.extui %9 : vector<16x16xi1> to vector<16x16xi32>
    %11 = arith.sitofp %10 : vector<16x16xi32> to vector<16x16xf32>
    %c0 = arith.constant 0 : index
    %c0_1 = arith.constant 0 : index
    %c0_2 = arith.constant 0 : index
    %12 = vector.load %arg1[%c0, %c0_1, %c0_2] : memref<1x16x64xf32, #tpu.memory_space<vmem>>, vector<1x16x64xf32>
    %13 = vector.shape_cast %12 : vector<1x16x64xf32> to vector<16x64xf32>
    %cst = arith.constant dense<0.000000e+00> : vector<16x64xf32>
    %14 = tpu.matmul %6, %13, %cst {dimension_numbers = #tpu.dot_dimension_numbers<[1], [0], [0], [1], [0, 0, 1, 1], [], []>} : vector<16x16xf32>, vector<16x64xf32>, vector<16x64xf32> -> vector<16x64xf32>
    %cst_3 = arith.constant dense<0.000000e+00> : vector<16x64xf32>
    %15 = tpu.matmul %11, %13, %cst_3 {dimension_numbers = #tpu.dot_dimension_numbers<[1], [0], [0], [1], [0, 0, 1, 1], [], []>} : vector<16x16xf32>, vector<16x64xf32>, vector<16x64xf32> -> vector<16x64xf32>
    %c0_4 = arith.constant 0 : index
    %c0_5 = arith.constant 0 : index
    %c0_6 = arith.constant 0 : index
    %16 = vector.load %arg2[%c0_4, %c0_5, %c0_6] : memref<3x64x128xf32, #tpu.memory_space<vmem>>, vector<1x64x128xf32>
    %17 = vector.shape_cast %16 : vector<1x64x128xf32> to vector<64x128xf32>
    %cst_7 = arith.constant dense<0.000000e+00> : vector<16x128xf32>
    %18 = tpu.matmul %14, %17, %cst_7 {dimension_numbers = #tpu.dot_dimension_numbers<[1], [0], [0], [1], [0, 0, 1, 1], [], []>} : vector<16x64xf32>, vector<64x128xf32>, vector<16x128xf32> -> vector<16x128xf32>
    %c1 = arith.constant 1 : index
    %c0_8 = arith.constant 0 : index
    %c0_9 = arith.constant 0 : index
    %19 = vector.load %arg2[%c1, %c0_8, %c0_9] : memref<3x64x128xf32, #tpu.memory_space<vmem>>, vector<1x64x128xf32>
    %20 = vector.shape_cast %19 : vector<1x64x128xf32> to vector<64x128xf32>
    %cst_10 = arith.constant dense<0.000000e+00> : vector<16x128xf32>
    %21 = tpu.matmul %13, %20, %cst_10 {dimension_numbers = #tpu.dot_dimension_numbers<[1], [0], [0], [1], [0, 0, 1, 1], [], []>} : vector<16x64xf32>, vector<64x128xf32>, vector<16x128xf32> -> vector<16x128xf32>
    %22 = arith.addf %18, %21 : vector<16x128xf32>
    %c2 = arith.constant 2 : index
    %c0_11 = arith.constant 0 : index
    %c0_12 = arith.constant 0 : index
    %23 = vector.load %arg2[%c2, %c0_11, %c0_12] : memref<3x64x128xf32, #tpu.memory_space<vmem>>, vector<1x64x128xf32>
    %24 = vector.shape_cast %23 : vector<1x64x128xf32> to vector<64x128xf32>
    %cst_13 = arith.constant dense<0.000000e+00> : vector<16x128xf32>
    %25 = tpu.matmul %15, %24, %cst_13 {dimension_numbers = #tpu.dot_dimension_numbers<[1], [0], [0], [1], [0, 0, 1, 1], [], []>} : vector<16x64xf32>, vector<64x128xf32>, vector<16x128xf32> -> vector<16x128xf32>
    %26 = arith.addf %22, %25 : vector<16x128xf32>
    %c0_14 = arith.constant 0 : index
    %c0_15 = arith.constant 0 : index
    %27 = vector.load %arg3[%c0_14, %c0_15] : memref<1x128xf32, #tpu.memory_space<vmem>>, vector<1x128xf32>
    %28 = vector.broadcast %27 : vector<1x128xf32> to vector<16x128xf32>
    %29 = arith.addf %26, %28 : vector<16x128xf32>
    %cst_16 = arith.constant 0.000000e+00 : f32
    %30 = vector.broadcast %cst_16 : f32 to vector<16x128xf32>
    %31 = arith.maximumf %29, %30 : vector<16x128xf32>
    %cst_17 = arith.constant dense<0.000000e+00> : vector<16x128xf32>
    %32 = tpu.matmul %6, %31, %cst_17 {dimension_numbers = #tpu.dot_dimension_numbers<[1], [0], [0], [1], [0, 0, 1, 1], [], []>} : vector<16x16xf32>, vector<16x128xf32>, vector<16x128xf32> -> vector<16x128xf32>
    %cst_18 = arith.constant dense<0.000000e+00> : vector<16x128xf32>
    %33 = tpu.matmul %11, %31, %cst_18 {dimension_numbers = #tpu.dot_dimension_numbers<[1], [0], [0], [1], [0, 0, 1, 1], [], []>} : vector<16x16xf32>, vector<16x128xf32>, vector<16x128xf32> -> vector<16x128xf32>
    %c0_19 = arith.constant 0 : index
    %c0_20 = arith.constant 0 : index
    %c0_21 = arith.constant 0 : index
    %34 = vector.load %arg4[%c0_19, %c0_20, %c0_21] : memref<3x128x128xf32, #tpu.memory_space<vmem>>, vector<1x128x128xf32>
    %35 = vector.shape_cast %34 : vector<1x128x128xf32> to vector<128x128xf32>
    %cst_22 = arith.constant dense<0.000000e+00> : vector<16x128xf32>
    %36 = tpu.matmul %32, %35, %cst_22 {dimension_numbers = #tpu.dot_dimension_numbers<[1], [0], [0], [1], [0, 0, 1, 1], [], []>} : vector<16x128xf32>, vector<128x128xf32>, vector<16x128xf32> -> vector<16x128xf32>
    %c1_23 = arith.constant 1 : index
    %c0_24 = arith.constant 0 : index
    %c0_25 = arith.constant 0 : index
    %37 = vector.load %arg4[%c1_23, %c0_24, %c0_25] : memref<3x128x128xf32, #tpu.memory_space<vmem>>, vector<1x128x128xf32>
    %38 = vector.shape_cast %37 : vector<1x128x128xf32> to vector<128x128xf32>
    %cst_26 = arith.constant dense<0.000000e+00> : vector<16x128xf32>
    %39 = tpu.matmul %31, %38, %cst_26 {dimension_numbers = #tpu.dot_dimension_numbers<[1], [0], [0], [1], [0, 0, 1, 1], [], []>} : vector<16x128xf32>, vector<128x128xf32>, vector<16x128xf32> -> vector<16x128xf32>
    %40 = arith.addf %36, %39 : vector<16x128xf32>
    %c2_27 = arith.constant 2 : index
    %c0_28 = arith.constant 0 : index
    %c0_29 = arith.constant 0 : index
    %41 = vector.load %arg4[%c2_27, %c0_28, %c0_29] : memref<3x128x128xf32, #tpu.memory_space<vmem>>, vector<1x128x128xf32>
    %42 = vector.shape_cast %41 : vector<1x128x128xf32> to vector<128x128xf32>
    %cst_30 = arith.constant dense<0.000000e+00> : vector<16x128xf32>
    %43 = tpu.matmul %33, %42, %cst_30 {dimension_numbers = #tpu.dot_dimension_numbers<[1], [0], [0], [1], [0, 0, 1, 1], [], []>} : vector<16x128xf32>, vector<128x128xf32>, vector<16x128xf32> -> vector<16x128xf32>
    %44 = arith.addf %40, %43 : vector<16x128xf32>
    %c0_31 = arith.constant 0 : index
    %c0_32 = arith.constant 0 : index
    %45 = vector.load %arg5[%c0_31, %c0_32] : memref<1x128xf32, #tpu.memory_space<vmem>>, vector<1x128xf32>
    %46 = vector.broadcast %45 : vector<1x128xf32> to vector<16x128xf32>
    %47 = arith.addf %44, %46 : vector<16x128xf32>
    %cst_33 = arith.constant 0.000000e+00 : f32
    %48 = vector.broadcast %cst_33 : f32 to vector<16x128xf32>
    %49 = arith.maximumf %47, %48 : vector<16x128xf32>
    %c0_34 = arith.constant 0 : index
    %c0_35 = arith.constant 0 : index
    %c0_36 = arith.constant 0 : index
    %50 = vector.load %arg6[%c0_34, %c0_35, %c0_36] : memref<1x16x128xf32, #tpu.memory_space<vmem>>, vector<1x16x128xf32>
    %51 = vector.shape_cast %50 : vector<1x16x128xf32> to vector<16x128xf32>
    %52 = vector.shape_cast %49 : vector<16x128xf32> to vector<1x16x128xf32>
    tpu.vector_store %arg6[%c0_34, %c0_35, %c0_36], %52 {strides = array<i32>} : memref<1x16x128xf32, #tpu.memory_space<vmem>>, vector<1x16x128xf32>,
    return
  }
  func.func @transform_0(%arg0: i32) -> (i32, i32, i32) {
    %c0_i32 = arith.constant 0 : i32
    %c0_i32_0 = arith.constant 0 : i32
    %c0_i32_1 = arith.constant 0 : i32
    return %arg0, %c0_i32, %c0_i32_0 : i32, i32, i32
  }
  func.func @transform_1(%arg0: i32) -> (i32, i32, i32) {
    %c0_i32 = arith.constant 0 : i32
    %c0_i32_0 = arith.constant 0 : i32
    %c0_i32_1 = arith.constant 0 : i32
    %c0_i32_2 = arith.constant 0 : i32
    return %c0_i32, %c0_i32_0, %c0_i32_1 : i32, i32, i32
  }
  func.func @transform_2(%arg0: i32) -> (i32, i32) {
    %c0_i32 = arith.constant 0 : i32
    %c0_i32_0 = arith.constant 0 : i32
    %c0_i32_1 = arith.constant 0 : i32
    return %c0_i32, %c0_i32_0 : i32, i32
  }
  func.func @transform_3(%arg0: i32) -> (i32, i32, i32) {
    %c0_i32 = arith.constant 0 : i32
    %c0_i32_0 = arith.constant 0 : i32
    %c0_i32_1 = arith.constant 0 : i32
    %c0_i32_2 = arith.constant 0 : i32
    return %c0_i32, %c0_i32_0, %c0_i32_1 : i32, i32, i32
  }
  func.func @transform_4(%arg0: i32) -> (i32, i32) {
    %c0_i32 = arith.constant 0 : i32
    %c0_i32_0 = arith.constant 0 : i32
    %c0_i32_1 = arith.constant 0 : i32
    return %c0_i32, %c0_i32_0 : i32, i32
  }
  func.func @transform_5(%arg0: i32) -> (i32, i32, i32) {
    %c0_i32 = arith.constant 0 : i32
    %c0_i32_0 = arith.constant 0 : i32
    %c0_i32_1 = arith.constant 0 : i32
    return %arg0, %c0_i32, %c0_i32_0 : i32, i32, i32
  }
}

</mosaic_0001>

<bundles_post_ra>
// kernel: tpu_custom_call.1
= control target key start
LH: loop header
LB: loop body
LE: loop exit
PB: predicated region body
PF: predicated region fallthrough
CT: control target
= control target key end

     0   :  { %10 = vsyncpa [#allocation3], 0  ;;  %s2120_s0 = inlined_call_operand.hbm [shape: f32[2,16,64], index: 0, kind: input, shape index: {}]   ;;  %s2121_s1 = inlined_call_operand.hbm [shape: f32[3,64,128], index: 1, kind: input, shape index: {}]   ;;  %s2122_s2 = inlined_call_operand.vmem [shape: f32[1,128], index: 2, kind: input, shape index: {}]   ;;  %s2123_s3 = inlined_call_operand.hbm [shape: f32[3,128,128], index: 3, kind: input, shape index: {}]   ;;  %s2124_s4 = inlined_call_operand.vmem [shape: f32[1,128], index: 4, kind: input, shape index: {}]   ;;  %s2125_s5 = inlined_call_operand.hbm [shape: f32[2,16,128], index: 5, kind: output, shape index: {}]  }
   0x1   :  { %12 = vsyncpa [#allocation3 + $0x1], 0 }
   0x2   :  { %13 = vsyncpa [#allocation6], 0 }
   0x3   :  { %14 = vsyncpa [#allocation4], 0 }
   0x4   :  { %16 = vsyncpa [#allocation4 + $0x1], 0  ;;  %s1880_s18 = smov 0   ;;  %s1882_s19 = smov 0  }
   0x5   :  { %s1884_s20 = smov 0   ;;  %s1886_s21 = smov 0  }
   0x6 LB: > { %s1901_s22 = sadd.s32 4294967295, %s1839_s21   ;;  %s1287_s23 = sadd.s32 4294967294, %s1839_s21   ;;  %s1839_s21 = sphi %s1886_s21, %s2148_s21   ;;  %s1835_s20 = sphi %s1884_s20, %s2147_s20   ;;  %s1831_s19 = sphi %s1882_s19, %s2146_s19   ;;  %s1827_s18 = sphi %s1880_s18, %s2145_s18  }
   0x7   : > { %p42_p0 = scmp.ne.s32.totalorder %s1831_s19, %s1827_s18  ;;  %p2126_p1 = scmp.eq.s32.totalorder %s1901_s22, 0 }
   0x8   : > { %p150_p2 = scmp.eq.s32.totalorder %s1901_s22, 1  ;;  %p156_p3 = scmp.eq.s32.totalorder %s1287_s23, 1 }
   0x9   : > { %p1910_p4 = por %p2126_p1, %p42_p0  ;;  %p1288_p5 = scmp.ge.s32.totalorder %s1839_s21, 1 }
   0xa   : > { %p1915_p6 = por %p156_p3, %p42_p0  ;;  %p163_p7 = scmp.lt.s32.totalorder %s1839_s21, 3 }
   0xb   : > { %s2131_s24 = scalar_select %p1910_p4, 1, 0 }
   0xc   : > { %s2132_s25 = scalar_select %p1915_p6, 1, 0 }
   0xd   : > { %p1920_p8 = pnand %p1288_p5, %p163_p7  ;;  %s1841_s27 = smov [#allocation5]  }
   0xe   : > { %s175_s28 = sshll.u32 %s1841_s27, 4  ;;  %s1842_s30 = smov [#allocation7]   ;;  %s176_s28 = int_to_ptr.vmem [resolvable:$true] %s175_s28 }
   0xf   : > { %s2133_s26 = scalar_select %p1920_p8, 1, 0 }
  0x10   : > { %p1631_p9 = pneg %p1920_p8  ;;  %s191_s6 = sshll.u32 %s1842_s30, 4  ;;  %s192_s6 = int_to_ptr.vmem [resolvable:$true] %s191_s6 }
  0x11   : > { %s1702_s7 = scalar_lea.vmem %s176_s28, 3072  ;;  %p1710_p5 = scmp.lt.s32.totalorder %s176_s28, %s176_s28 }
  0x12   : > { %p1929_p11 = pnand %p1631_p9, %p2126_p1  ;;  %p1703_p13 = scmp.ne.s32.totalorder %s176_s28, %s1702_s7 }
  0x13   : > { %p1711_p7 = scmp.lt.s32.totalorder %s1702_s7, %s1702_s7 }
  0x14   : > { %p1693_p12 = pneg %p1929_p11 }
  0x15   : > { %p1712_p10 = por %p1711_p7, %p1710_p5 }
  0x16   : > { %p1705_p0 = pnand %p1703_p13, %p1693_p12 }
  0x18   : > { %p1706_p3 = pneg %p1705_p0 }
  0x1a   : > { %p1713_p9 = pnand %p1712_p10, %p1706_p3 }
  0x1c   : > { %1716 = shalt.err (!%p1713_p9)
}
  0x1d   : > { %s2127_s8 = smov 128   ;;  %s1844_s9 = smov 8  }
  0x1e   : > { %1634 = dma.hbm_to_vmem [thread:$0]  (!%p1929_p11), %s2121_s1, 3072, %s176_s28, [#allocation6], %s2127_s8, %s2127_s8, %s1844_s9  }
  0x1f   : > { %s1728_s12 = scalar_lea.vmem %s192_s6, 6144  ;;  %p1736_p10 = scmp.lt.s32.totalorder %s192_s6, %s192_s6 }
  0x20   : > { %p1729_p13 = scmp.ne.s32.totalorder %s192_s6, %s1728_s12  ;;  %p1737_p3 = scmp.lt.s32.totalorder %s1728_s12, %s1728_s12 }
  0x22   : > { %p1731_p0 = pnand %p1729_p13, %p1693_p12  ;;  %p1738_p7 = por %p1737_p3, %p1736_p10 }
  0x24   : > { %p1732_p5 = pneg %p1731_p0 }
  0x26   : > { %p1739_p9 = pnand %p1738_p7, %p1732_p5 }
  0x28   : > { %1742 = shalt.err (!%p1739_p9)
}
  0x29   : > { %1637 = dma.hbm_to_vmem [thread:$0]  (!%p1929_p11), %s2123_s3, 6144, %s192_s6, [#allocation6], %s2127_s8, %s2127_s8, %s1844_s9  }
  0x2a   : > { %s1958_s15 = sadd.s32 1, %s1839_s21   ;;  %s29_s16 = sadd.s32 1, %s1835_s20 }
  0x2b   : > { %s26_s17 = ssub.s32 %s1839_s21, %s1958_s15  ;;  %p36_p12 = scmp.ne.s32.totalorder %s1835_s20, %s1831_s19 }
  0x2c   : > { %p27_p13 = scmp.eq.s32.totalorder %s26_s17, 0  ;;  %p37_p0 = scmp.eq.s32.totalorder %s1839_s21, 0 }
  0x2d   : > { %p1968_p5 = por %p150_p2, %p36_p12  ;;  %p1648_p10 = scmp.lt.s32.totalorder %s1839_s21, 2 }
  0x2e   : > { %s1974_s27 = scalar_select %p27_p13, %s1835_s20, %s29_s16  }
  0x2f   : > { %s2135_s23 = scalar_select %p1968_p5, 1, 0 }
  0x30   : > { %p38_p3 = por %p37_p0, %p36_p12  ;;  %s208_s28 = sand.u32 1, %s1835_s20  }
  0x31   : > { %s1292_s29 = sshll.u32 %s208_s28, 4  ;;  %s1327_s30 = sshll.u32 %s1839_s21, 8 }
  0x32   : > { %s1981_s10 = scalar_lea.hbm %s2120_s0, %s1327_s30  ;;  %s212_s11 = scalar_lea.vmem [#allocation2], %s1292_s29 }
  0x33   : > { %s219_s12 = sshll.u32 %s212_s11, 4  ;;  %p1985_p2 = pnand %p1648_p10, %p38_p3  ;;  %s1983_s12 = int_to_ptr.vmem [resolvable:$true] %s219_s12 }
  0x34   : > { %s1989_s14 = scalar_lea.sflag [#allocation3], %s208_s28  ;;  %s1743_s16 = scalar_lea.hbm %s1981_s10, 256 }
  0x35   : > { %p1744_p11 = scmp.ne.s32.totalorder %s1981_s10, %s1743_s16  ;;  %p1745_p7 = pneg %p1985_p2 }
  0x36   : > { %s1748_s29 = scalar_lea.hbm %s2120_s0, 512  ;;  %p1749_p13 = scmp.lt.s32.totalorder %s1981_s10, %s2120_s0 }
  0x37   : > { %p1746_p9 = pnand %p1745_p7, %p1744_p11  ;;  %p1750_p0 = scmp.lt.s32.totalorder %s1748_s29, %s1743_s16 }
  0x39   : > { %p1747_p12 = pneg %p1746_p9  ;;  %p1751_p10 = por %p1750_p0, %p1749_p13 }
  0x3b   : > { %p1752_p3 = pnand %p1751_p10, %p1747_p12 }
  0x3d   : > { %1755 = shalt.err (!%p1752_p3)
}
  0x3e   : > { %s1756_s28 = scalar_lea.vmem %s1983_s12, 256  ;;  %s1845_s11 = smov [#allocation2]  }
  0x3f   : > { %p1757_p1 = scmp.ne.s32.totalorder %s1983_s12, %s1756_s28  ;;  %s1761_s8 = sshll.u32 %s1845_s11, 4  ;;  %s1762_s8 = int_to_ptr.vmem [resolvable:$false] %s1761_s8 }
  0x40   : > { %s1763_s17 = scalar_lea.vmem %s1762_s8, 512  ;;  %p1764_p9 = scmp.lt.s32.totalorder %s1983_s12, %s1762_s8 }
  0x41   : > { %p1759_p6 = pnand %p1757_p1, %p1745_p7  ;;  %p1765_p5 = scmp.lt.s32.totalorder %s1763_s17, %s1756_s28 }
  0x43   : > { %p1760_p11 = pneg %p1759_p6  ;;  %p1766_p4 = por %p1765_p5, %p1764_p9 }
  0x45   : > { %p1767_p8 = pnand %p1766_p4, %p1760_p11 }
  0x47   : > { %1770 = shalt.err (!%p1767_p8)
}
  0x48   : > { %s2137_s16 = smov 128   ;;  %p2138_p1 = scmp.ne.s32.totalorder %s2133_s26, 0 }
  0x49   : > { %1641 = dma.hbm_to_vmem [thread:$0]  (!%p1985_p2), %s1981_s10, 256, %s1983_s12, %s1989_s14, %s2137_s16, %s2137_s16, %s1844_s9  }
  0x4a   : > { %231 = sbr.rel (%p2138_p1) target bundleno = 923 (0x39b), region = 40  ;;  %s2016_s30 = sand.u32 (!%p2138_p1), 1, %s1831_s19  }
  0x4b   : > { %s1296_s8 = sshll.u32 (!%p2138_p1), %s2016_s30, 4  ;;  %s234_s29 = scalar_lea.sflag (!%p2138_p1), [#allocation3], %s2016_s30 }
  0x4c   : > { %s237_s13 = scalar_lea.vmem (!%p2138_p1), [#allocation2], %s1296_s8  ;;  %p2139_p4 = scmp.ne.s32.totalorder (!%p2138_p1), %s2131_s24, 0 }
  0x4f   : > { %1814 = dma.done.wait (%p2139_p4), %s234_s29, 256  }
  0x50   : > { %1816 = vsyncadd (%p2139_p4), %s234_s29, 4294967040  ;;  %p2140_p6 = scmp.eq.s32.totalorder %s1901_s22, 0 }
  0x52   : > { %1818 = dma.done.wait (%p2140_p6), [#allocation6], 9216   ;;  %p2141_p8 = pmov %p2140_p6 }
  0x53   : > { %v272_v0 = vlaneseq  ;;  %vm295_vm0 = vcmask 130048   ;;  %v294_v8 = vld [vmem:[%s237_s13 + $0x8] sm:$0xff]  ;;  %v293_v9 = vld [vmem:[%s237_s13] sm:$0xff]  ;;  %v1846_v10 = vmov 0.0   ;;  %vm475_vm5 = vcmask 523264   ;;  %s271_s12 = scalar_lea.vmem [#allocation8], %s1296_s8 }
  0x54   : > { %1820 = vsyncadd (%p2141_p8), [#allocation6], 4294958080  ;;  %v474_v12 = vld [vmem:[#allocation5 + $0x78] sm:$0xff]  ;;  %1429 = vmatprep.subr.mxu1 %v294_v8  ;;  %v473_v13 = vld [vmem:[#allocation5 + $0x70] sm:$0xff]  ;;  %1459 = vmatprep.mubr.msk.f32.mxu0 %vm475_vm5, %v293_v9  ;;  %s1195_s14 = sshll.u32 %s271_s12, 4  ;;  %s1328_s6 = sshll.u32 %s1901_s22, 8  ;;  %s2072_s14 = int_to_ptr.vmem [resolvable:$true] %s1195_s14 }
  0x55   : > { %v273_v1 = vshrl.u32 %v272_v0, 7  ;;  %v276_v2 = vand.u32 127, %v272_v0  ;;  %1430 = vmatpush3.msra.mxu1 %v294_v8  ;;  %1443 = vmatprep.subr.mxu0 %v474_v12  ;;  %v472_v16 = vld [vmem:[#allocation5 + $0x68] sm:$0xff]  ;;  %v471_v18 = vld [vmem:[#allocation5 + $0x60] sm:$0xff]  ;;  %v470_v19 = vld [vmem:[#allocation5 + $0x58] sm:$0xff]  ;;  %s2077_s11 = scalar_lea.hbm %s2125_s5, %s1328_s6  ;;  %s1182_s17 = scalar_lea.sflag [#allocation4], %s2016_s30 }
  0x56   : > { %1431 = vmatprep.subr.mxu1 %v293_v9  ;;  %1444 = vmatpush3.msra.mxu0 %v474_v12  ;;  %v469_v20 = vld [vmem:[#allocation5 + $0x50] sm:$0xff]  ;;  %v468_v21 = vld [vmem:[#allocation5 + $0x48] sm:$0xff]  ;;  %v467_v22 = vld [vmem:[#allocation5 + $0x40] sm:$0xff]  ;;  %s1771_s16 = scalar_lea.vmem %s2072_s14, 256  ;;  %p2142_p2 = scmp.ne.s32.totalorder %s2135_s23, 0 }
  0x57   : > { %v1300_v3 = vadd.s32 4294967295, %v273_v1  ;;  %v274_v4 = vadd.s32 8, %v273_v1  ;;  %v285_v5 = vadd.s32 1, %v273_v1  ;;  %1432 = vmatpush3.msra.mxu1 %v293_v9  ;;  %1445 = vmatprep.subr.mxu0 %v473_v13  ;;  %v465_v23 = vld [vmem:[#allocation5 + $0x38] sm:$0xff]  ;;  %v464_v24 = vld [vmem:[#allocation5 + $0x30] sm:$0xff]  ;;  %v463_v25 = vld [vmem:[#allocation5 + $0x28] sm:$0xff]  ;;  %p1772_p5 = scmp.ne.s32.totalorder %s2072_s14, %s1771_s16 }
  0x58   : > { %1436 = vmatprep.subr.mxu1 %v294_v8  ;;  %1446 = vmatpush3.msra.mxu0 %v473_v13  ;;  %v462_v26 = vld [vmem:[#allocation5 + $0x20] sm:$0xff]  ;;  %v461_v27 = vld [vmem:[#allocation5 + $0x18] sm:$0xff]  ;;  %v460_v28 = vld [vmem:[#allocation5 + $0x10] sm:$0xff]  ;;  %s1847_s22 = smov [#allocation8]  }
  0x59   : > { %vm279_vm1 = vcmp.eq.s32.totalorder %v276_v2, %v1300_v3  ;;  %v1301_v6 = vadd.s32 4294967295, %v274_v4  ;;  %v286_v7 = vadd.s32 1, %v274_v4  ;;  %vm287_vm2 = vcmp.eq.s32.totalorder %v276_v2, %v285_v5  ;;  %1447 = vmatprep.subr.mxu0 %v472_v16  ;;  %v459_v29 = vld [vmem:[#allocation5 + $0x8] sm:$0xff]  ;;  %v458_v30 = vld [vmem:[#allocation5] sm:$0xff]  ;;  %v646_v31 = vld [vmem:[#allocation5 + $0xb8] sm:$0xff]  ;;  %p1773_p7 = pnand %p1772_p5, %p2142_p2  ;;  %s1775_s8 = sshll.u32 %s1847_s22, 4  ;;  %s1776_s8 = int_to_ptr.vmem [resolvable:$false] %s1775_s8 }
  0x5a   : > { %v1302_v11 = vsel %vm279_vm1, 1.0, %v1846_v10  ;;  %v2033_v15 = vsel %vm287_vm2, 1.0, %v1846_v10  ;;  %1448 = vmatpush3.msra.mxu0 %v472_v16  ;;  %v645_v34 = vld [vmem:[#allocation5 + $0xb0] sm:$0xff]  ;;  %v644_v36 = vld [vmem:[#allocation5 + $0xa8] sm:$0xff]  ;;  %v643_v38 = vld [vmem:[#allocation5 + $0xa0] sm:$0xff]  ;;  %s1777_s29 = scalar_lea.vmem %s1776_s8, 512  ;;  %p1778_p13 = scmp.lt.s32.totalorder %s2072_s14, %s1776_s8 }
  0x5b   : > { %1433 = vmatprep.mubr.msk.f32.mxu1 %vm295_vm0, %v1302_v11  ;;  %vm280_vm3 = vcmp.eq.s32.totalorder %v276_v2, %v1301_v6  ;;  %vm288_vm4 = vcmp.eq.s32.totalorder %v276_v2, %v286_v7  ;;  %1449 = vmatprep.subr.mxu0 %v471_v18  ;;  %v642_v39 = vld [vmem:[#allocation5 + $0x98] sm:$0xff]  ;;  %v641_v40 = vld [vmem:[#allocation5 + $0x90] sm:$0xff]  ;;  %v640_v41 = vld [vmem:[#allocation5 + $0x88] sm:$0xff]  ;;  %p1774_p12 = pneg %p1773_p7  ;;  %p1779_p0 = scmp.lt.s32.totalorder %s1777_s29, %s1771_s16 }
  0x5c   : > { %v2031_v14 = vsel %vm280_vm3, 1.0, %v1846_v10  ;;  %v2039_v17 = vsel %vm288_vm4, 1.0, %v1846_v10  ;;  %1450 = vmatpush3.msra.mxu0 %v471_v18  ;;  %v639_v42 = vld [vmem:[#allocation5 + $0x80] sm:$0xff]  ;;  %v906_v43 = vld [vmem:[#allocation7 + $0x78] sm:$0xff]  ;;  %v905_v44 = vld [vmem:[#allocation7 + $0x70] sm:$0xff] }
  0x5d   : > { %1434 = vmatmul.mubr.msk.f32.vlgmr.msra.gmra.mxu1 %vm295_vm0, %v2031_v14  ;;  %1451 = vmatprep.subr.mxu0 %v470_v19  ;;  %v904_v45 = vld [vmem:[#allocation7 + $0x68] sm:$0xff]  ;;  %v903_v46 = vld [vmem:[#allocation7 + $0x60] sm:$0xff]  ;;  %v902_v47 = vld [vmem:[#allocation7 + $0x58] sm:$0xff]  ;;  %p1780_p10 = por %p1779_p0, %p1778_p13 }
  0x5e   : > { %1437 = vmatpush3.msra.mxu1 %v294_v8  ;;  %1440 = vmatprep.mubr.msk.f32.mxu1 %vm295_vm0, %v2033_v15  ;;  %v901_v48 = vld [vmem:[#allocation7 + $0x50] sm:$0xff]  ;;  %v900_v49 = vld [vmem:[#allocation7 + $0x48] sm:$0xff]  ;;  %v899_v50 = vld [vmem:[#allocation7 + $0x40] sm:$0xff] }
  0x5f   : > { %1438 = vmatprep.subr.mxu1 %v293_v9  ;;  %1452 = vmatpush3.msra.mxu0 %v470_v19  ;;  %v898_v51 = vld [vmem:[#allocation7 + $0x38] sm:$0xff]  ;;  %v897_v52 = vld [vmem:[#allocation7 + $0x30] sm:$0xff]  ;;  %v896_v53 = vld [vmem:[#allocation7 + $0x28] sm:$0xff]  ;;  %p1781_p3 = pnand %p1780_p10, %p1774_p12 }
  0x60   : > { %1439 = vmatpush3.msra.mxu1 %v293_v9  ;;  %1453 = vmatprep.subr.mxu0 %v469_v20  ;;  %v895_v54 = vld [vmem:[#allocation7 + $0x20] sm:$0xff]  ;;  %v894_v55 = vld [vmem:[#allocation7 + $0x18] sm:$0xff]  ;;  %v893_v56 = vld [vmem:[#allocation7 + $0x10] sm:$0xff] }
  0x61   : > { %1441 = vmatmul.mubr.msk.f32.vlgmr.msra.gmra.mxu1 %vm295_vm0, %v2039_v17  ;;  %1454 = vmatpush3.msra.mxu0 %v469_v20  ;;  %v1316_v63 = vld [vmem:[%s2122_s2] ss:$0 sm:$0xff]  ;;  %v922_v9 = vld [vmem:[#allocation7 + $0xf0] sm:$0xff]  ;;  %v921_v10 = vld [vmem:[#allocation7 + $0xe8] sm:$0xff] }
  0x62   : > { %1504 = vmatprep.mubr.msk.f32.mxu1 %vm295_vm0, %v1302_v11  ;;  %1455 = vmatprep.subr.mxu0 %v468_v21  ;;  %v920_v11 = vld [vmem:[#allocation7 + $0xe0] sm:$0xff]  ;;  %v919_v12 = vld [vmem:[#allocation7 + $0xd8] sm:$0xff]  ;;  %v918_v13 = vld [vmem:[#allocation7 + $0xd0] sm:$0xff] }
  0x63   : > { %1456 = vmatpush3.msra.mxu0 %v468_v21  ;;  %v915_v16 = vld [vmem:[#allocation7 + $0xb8] sm:$0xff]  ;;  %v913_v18 = vld [vmem:[#allocation7 + $0xa8] sm:$0xff]  ;;  %v912_v19 = vld [vmem:[#allocation7 + $0xa0] sm:$0xff] }
  0x64   : > { %1457 = vmatprep.subr.mxu0 %v467_v22  ;;  %v911_v20 = vld [vmem:[#allocation7 + $0x98] sm:$0xff]  ;;  %v910_v21 = vld [vmem:[#allocation7 + $0x90] sm:$0xff] }
  0x65   : > { %1458 = vmatpush3.msra.mxu0 %v467_v22  ;;  %v909_v22 = vld [vmem:[#allocation7 + $0x88] sm:$0xff] }
  0x66   : > { %1460 = vmatmul.mubr.msk.f32.vlgmr.msra.gmra.mxu0 %vm475_vm5, %v294_v8  ;;  %1462 = vmatprep.subr.mxu0 %v465_v23  ;;  %v923_v8 = vld [vmem:[#allocation7 + $0xf8] sm:$0xff] }
  0x67   : > { %1463 = vmatpush3.msra.mxu0 %v465_v23  ;;  %v908_v23 = vld [vmem:[#allocation7 + $0x80] sm:$0xff] }
  0x68   : > { %1464 = vmatprep.subr.mxu0 %v464_v24 }
  0x69   : > { %1465 = vmatpush3.msra.mxu0 %v464_v24  ;;  %v1090_v24 = vld [vmem:[#allocation7 + $0x178] sm:$0xff] }
  0x6a   : > { %1466 = vmatprep.subr.mxu0 %v463_v25 }
  0x6b   : > { %1467 = vmatpush3.msra.mxu0 %v463_v25  ;;  %v1089_v25 = vld [vmem:[#allocation7 + $0x170] sm:$0xff] }
  0x6c   : > { %1468 = vmatprep.subr.mxu0 %v462_v26 }
  0x6d   : > { %1469 = vmatpush3.msra.mxu0 %v462_v26  ;;  %v1088_v26 = vld [vmem:[#allocation7 + $0x168] sm:$0xff] }
  0x6e   : > { %1470 = vmatprep.subr.mxu0 %v461_v27 }
  0x6f   : > { %1471 = vmatpush3.msra.mxu0 %v461_v27  ;;  %v1087_v27 = vld [vmem:[#allocation7 + $0x160] sm:$0xff] }
  0x70   : > { %1472 = vmatprep.subr.mxu0 %v460_v28 }
  0x71   : > { %1473 = vmatpush3.msra.mxu0 %v460_v28  ;;  %v1086_v28 = vld [vmem:[#allocation7 + $0x158] sm:$0xff] }
  0x72   : > { %1474 = vmatprep.subr.mxu0 %v459_v29 }
  0x73   : > { %1475 = vmatpush3.msra.mxu0 %v459_v29  ;;  %v1085_v29 = vld [vmem:[#allocation7 + $0x150] sm:$0xff] }
  0x74   : > { %1476 = vmatprep.subr.mxu0 %v458_v30 }
  0x75   : > { %1477 = vmatpush3.msra.mxu0 %v458_v30  ;;  %v1084_v30 = vld [vmem:[#allocation7 + $0x148] sm:$0xff] }
  0x76   : > { %1481 = vmatprep.subr.mxu0 %v646_v31 }
 0x11d   : > { %v1435_v32 = vpop.f32.mrf.mxu1 }
 0x11f   : > { %v368_v33 = vpop.f32.mrf.mxu1 }
 0x120   : > { %1478 = vmatprep.mubr.msk.f32.mxu0 %vm475_vm5, %v368_v33  ;;  %v1081_v33 = vld [vmem:[#allocation7 + $0x130] sm:$0xff] }
 0x121   : > { %1479 = vmatmul.mubr.msk.f32.vlgmr.msra.gmra.mxu0 %vm475_vm5, %v1435_v32  ;;  %v1442_v35 = vpop.f32.mrf.mxu1  ;;  %v1082_v32 = vld [vmem:[#allocation7 + $0x138] sm:$0xff] }
 0x122   : > { %1482 = vmatpush3.msra.mxu0 %v646_v31  ;;  %v1083_v31 = vld [vmem:[#allocation7 + $0x140] sm:$0xff] }
 0x123   : > { %1483 = vmatprep.subr.mxu0 %v645_v34  ;;  %v449_v37 = vpop.f32.mrf.mxu1 }
 0x124   : > { %1484 = vmatpush3.msra.mxu0 %v645_v34  ;;  %1497 = vmatprep.mubr.msk.f32.mxu0 %vm475_vm5, %v449_v37  ;;  %v1080_v34 = vld [vmem:[#allocation7 + $0x128] sm:$0xff]  ;;  %v1078_v37 = vld [vmem:[#allocation7 + $0x118] sm:$0xff] }
 0x125   : > { %1485 = vmatprep.subr.mxu0 %v644_v36 }
 0x126   : > { %1486 = vmatpush3.msra.mxu0 %v644_v36  ;;  %v1461_v57 = vpop.f32.mrf.mxu0  ;;  %v892_v36 = vld [vmem:[#allocation7 + $0x8] sm:$0xff] }
 0x127   : > { %1487 = vmatprep.subr.mxu0 %v643_v38 }
 0x128   : > { %1488 = vmatpush3.msra.mxu0 %v643_v38  ;;  %v548_v58 = vpop.f32.mrf.mxu0  ;;  %v891_v38 = vld [vmem:[#allocation7] sm:$0xff] }
 0x129   : > { %1489 = vmatprep.subr.mxu0 %v642_v39 }
 0x12a   : > { %1490 = vmatpush3.msra.mxu0 %v642_v39  ;;  %v1077_v39 = vld [vmem:[#allocation7 + $0x110] sm:$0xff] }
 0x12b   : > { %1491 = vmatprep.subr.mxu0 %v641_v40 }
 0x12c   : > { %1492 = vmatpush3.msra.mxu0 %v641_v40  ;;  %v1076_v40 = vld [vmem:[#allocation7 + $0x108] sm:$0xff] }
 0x12d   : > { %1493 = vmatprep.subr.mxu0 %v640_v41 }
 0x12e   : > { %1494 = vmatpush3.msra.mxu0 %v640_v41  ;;  %v1075_v41 = vld [vmem:[#allocation7 + $0x100] sm:$0xff] }
 0x12f   : > { %1495 = vmatprep.subr.mxu0 %v639_v42 }
 0x130   : > { %1496 = vmatpush3.msra.mxu0 %v639_v42 }
 0x131   : > { %1498 = vmatmul.mubr.msk.f32.vlgmr.msra.gmra.mxu0 %vm475_vm5, %v1442_v35  ;;  %1549 = vmatprep.subr.mxu0 %v906_v43  ;;  %v1079_v35 = vld [vmem:[#allocation7 + $0x120] sm:$0xff] }
 0x132   : > { %1550 = vmatpush3.msra.mxu0 %v906_v43 }
 0x133   : > { %1551 = vmatprep.subr.mxu0 %v905_v44 }
 0x134   : > { %1552 = vmatpush3.msra.mxu0 %v905_v44 }
 0x135   : > { %1553 = vmatprep.subr.mxu0 %v904_v45 }
 0x136   : > { %1554 = vmatpush3.msra.mxu0 %v904_v45 }
 0x137   : > { %1555 = vmatprep.subr.mxu0 %v903_v46 }
 0x138   : > { %1556 = vmatpush3.msra.mxu0 %v903_v46 }
 0x139   : > { %1557 = vmatprep.subr.mxu0 %v902_v47 }
 0x13a   : > { %1558 = vmatpush3.msra.mxu0 %v902_v47 }
 0x13b   : > { %1559 = vmatprep.subr.mxu0 %v901_v48 }
 0x13c   : > { %1560 = vmatpush3.msra.mxu0 %v901_v48 }
 0x13d   : > { %1561 = vmatprep.subr.mxu0 %v900_v49 }
 0x13e   : > { %1562 = vmatpush3.msra.mxu0 %v900_v49 }
 0x13f   : > { %1563 = vmatprep.subr.mxu0 %v899_v50 }
 0x140   : > { %1564 = vmatpush3.msra.mxu0 %v899_v50 }
 0x141   : > { %1565 = vmatprep.subr.mxu0 %v898_v51 }
 0x142   : > { %1566 = vmatpush3.msra.mxu0 %v898_v51 }
 0x143   : > { %1567 = vmatprep.subr.mxu0 %v897_v52 }
 0x144   : > { %1568 = vmatpush3.msra.mxu0 %v897_v52  ;;  %v1321_v52 = vld [vmem:[%s2124_s4] ss:$0 sm:$0xff] }
 0x145   : > { %1569 = vmatprep.subr.mxu0 %v896_v53 }
 0x146   : > { %1570 = vmatpush3.msra.mxu0 %v896_v53 }
 0x147   : > { %1571 = vmatprep.subr.mxu0 %v895_v54 }
 0x148   : > { %1572 = vmatpush3.msra.mxu0 %v895_v54 }
 0x149   : > { %1573 = vmatprep.subr.mxu0 %v894_v55 }
 0x14a   : > { %1574 = vmatpush3.msra.mxu0 %v894_v55 }
 0x14b   : > { %1575 = vmatprep.subr.mxu0 %v893_v56 }
 0x14c   : > { %1576 = vmatpush3.msra.mxu0 %v893_v56 }
 0x14d   : > { %1577 = vmatprep.subr.mxu0 %v892_v36 }
 0x14e   : > { %1578 = vmatpush3.msra.mxu0 %v892_v36 }
 0x14f   : > { %1579 = vmatprep.subr.mxu0 %v891_v38 }
 0x150   : > { %1580 = vmatpush3.msra.mxu0 %v891_v38 }
 0x1e1   : > { %v1480_v59 = vpop.f32.mrf.mxu0 }
 0x1e2   : > { %v635_v61 = vadd.f32 %v1480_v59, %v1461_v57 }
 0x1e3   : > { %v629_v60 = vpop.f32.mrf.mxu0 }
 0x1e4   : > { %v630_v0 = vadd.f32 %v629_v60, %v548_v58 }
 0x1f1   : > { %v1499_v62 = vpop.f32.mrf.mxu0 }
 0x1f2   : > { %v729_v1 = vadd.f32 %v1499_v62, %v635_v61 }
 0x1f3   : > { %v719_v2 = vpop.f32.mrf.mxu0 }
 0x1f4   : > { %v738_v3 = vadd.f32 %v1316_v63, %v729_v1  ;;  %v728_v4 = vadd.f32 %v719_v2, %v630_v0 }
 0x1f6   : > { %v2053_v5 = vmax.f32 %v738_v3, 0.0  ;;  %v737_v6 = vadd.f32 %v1316_v63, %v728_v4 }
 0x1f8   : > { %v739_v7 = vmax.f32 %v737_v6, 0.0  ;;  %1500 = vmatprep.subr.mxu1 %v2053_v5 }
 0x1f9   : > { %1501 = vmatpush3.msra.mxu1 %v2053_v5 }
 0x1fa   : > { %1502 = vmatprep.subr.mxu1 %v739_v7 }
 0x1fb   : > { %1503 = vmatpush3.msra.mxu1 %v739_v7 }
 0x1fc   : > { %1505 = vmatmul.mubr.msk.f32.vlgmr.msra.gmra.mxu1 %vm295_vm0, %v2031_v14  ;;  %1507 = vmatprep.subr.mxu1 %v2053_v5  ;;  %v917_v14 = vld [vmem:[#allocation7 + $0xc8] sm:$0xff] }
 0x1fd   : > { %1508 = vmatpush3.msra.mxu1 %v2053_v5  ;;  %1511 = vmatprep.mubr.msk.f32.mxu1 %vm295_vm0, %v2033_v15  ;;  %v916_v15 = vld [vmem:[#allocation7 + $0xc0] sm:$0xff] }
 0x1fe   : > { %1509 = vmatprep.subr.mxu1 %v739_v7 }
 0x1ff   : > { %1510 = vmatpush3.msra.mxu1 %v739_v7 }
 0x200   : > { %1512 = vmatmul.mubr.msk.f32.vlgmr.msra.gmra.mxu1 %vm295_vm0, %v2039_v17  ;;  %1514 = vmatprep.subr.mxu1 %v923_v8  ;;  %v914_v17 = vld [vmem:[#allocation7 + $0xb0] sm:$0xff] }
 0x201   : > { %1515 = vmatpush3.msra.mxu1 %v923_v8  ;;  %1546 = vmatprep.mubr.f32.mxu1 %v739_v7 }
 0x202   : > { %1516 = vmatprep.subr.mxu1 %v922_v9 }
 0x203   : > { %1517 = vmatpush3.msra.mxu1 %v922_v9 }
 0x204   : > { %1518 = vmatprep.subr.mxu1 %v921_v10 }
 0x205   : > { %1519 = vmatpush3.msra.mxu1 %v921_v10 }
 0x206   : > { %1520 = vmatprep.subr.mxu1 %v920_v11 }
 0x207   : > { %1521 = vmatpush3.msra.mxu1 %v920_v11 }
 0x208   : > { %1522 = vmatprep.subr.mxu1 %v919_v12 }
 0x209   : > { %1523 = vmatpush3.msra.mxu1 %v919_v12 }
 0x20a   : > { %1524 = vmatprep.subr.mxu1 %v918_v13 }
 0x20b   : > { %1525 = vmatpush3.msra.mxu1 %v918_v13 }
 0x20c   : > { %1526 = vmatprep.subr.mxu1 %v917_v14 }
 0x20d   : > { %1527 = vmatpush3.msra.mxu1 %v917_v14 }
 0x20e   : > { %1528 = vmatprep.subr.mxu1 %v916_v15 }
 0x20f   : > { %1529 = vmatpush3.msra.mxu1 %v916_v15 }
 0x210   : > { %1530 = vmatprep.subr.mxu1 %v915_v16 }
 0x211   : > { %1531 = vmatpush3.msra.mxu1 %v915_v16 }
 0x212   : > { %1532 = vmatprep.subr.mxu1 %v914_v17 }
 0x213   : > { %1533 = vmatpush3.msra.mxu1 %v914_v17 }
 0x214   : > { %1534 = vmatprep.subr.mxu1 %v913_v18 }
 0x215   : > { %1535 = vmatpush3.msra.mxu1 %v913_v18 }
 0x216   : > { %1536 = vmatprep.subr.mxu1 %v912_v19 }
 0x217   : > { %1537 = vmatpush3.msra.mxu1 %v912_v19 }
 0x218   : > { %1538 = vmatprep.subr.mxu1 %v911_v20 }
 0x219   : > { %1539 = vmatpush3.msra.mxu1 %v911_v20 }
 0x21a   : > { %1540 = vmatprep.subr.mxu1 %v910_v21 }
 0x21b   : > { %1541 = vmatpush3.msra.mxu1 %v910_v21 }
 0x21c   : > { %1542 = vmatprep.subr.mxu1 %v909_v22 }
 0x21d   : > { %1543 = vmatpush3.msra.mxu1 %v909_v22 }
 0x21e   : > { %1544 = vmatprep.subr.mxu1 %v908_v23 }
 0x21f   : > { %1545 = vmatpush3.msra.mxu1 %v908_v23 }
 0x220   : > { %1547 = vmatmul.mubr.f32.vlgmr.msra.gmra.mxu1 %v2053_v5  ;;  %1584 = vmatprep.subr.mxu1 %v1090_v24 }
 0x221   : > { %1585 = vmatpush3.msra.mxu1 %v1090_v24 }
 0x222   : > { %1586 = vmatprep.subr.mxu1 %v1089_v25 }
 0x223   : > { %1587 = vmatpush3.msra.mxu1 %v1089_v25 }
 0x224   : > { %1588 = vmatprep.subr.mxu1 %v1088_v26 }
 0x225   : > { %1589 = vmatpush3.msra.mxu1 %v1088_v26 }
 0x226   : > { %1590 = vmatprep.subr.mxu1 %v1087_v27 }
 0x227   : > { %1591 = vmatpush3.msra.mxu1 %v1087_v27 }
 0x228   : > { %1592 = vmatprep.subr.mxu1 %v1086_v28 }
 0x229   : > { %1593 = vmatpush3.msra.mxu1 %v1086_v28 }
 0x22a   : > { %1594 = vmatprep.subr.mxu1 %v1085_v29 }
 0x22b   : > { %1595 = vmatpush3.msra.mxu1 %v1085_v29 }
 0x22c   : > { %1596 = vmatprep.subr.mxu1 %v1084_v30 }
 0x22d   : > { %1597 = vmatpush3.msra.mxu1 %v1084_v30 }
 0x22e   : > { %1598 = vmatprep.subr.mxu1 %v1083_v31 }
 0x22f   : > { %1599 = vmatpush3.msra.mxu1 %v1083_v31 }
 0x230   : > { %1600 = vmatprep.subr.mxu1 %v1082_v32 }
 0x231   : > { %1601 = vmatpush3.msra.mxu1 %v1082_v32 }
 0x232   : > { %1602 = vmatprep.subr.mxu1 %v1081_v33 }
 0x233   : > { %1603 = vmatpush3.msra.mxu1 %v1081_v33 }
 0x234   : > { %1604 = vmatprep.subr.mxu1 %v1080_v34 }
 0x235   : > { %1605 = vmatpush3.msra.mxu1 %v1080_v34 }
 0x236   : > { %1606 = vmatprep.subr.mxu1 %v1079_v35 }
 0x237   : > { %1607 = vmatpush3.msra.mxu1 %v1079_v35 }
 0x238   : > { %1608 = vmatprep.subr.mxu1 %v1078_v37 }
 0x239   : > { %1609 = vmatpush3.msra.mxu1 %v1078_v37 }
 0x23a   : > { %1610 = vmatprep.subr.mxu1 %v1077_v39 }
 0x23b   : > { %1611 = vmatpush3.msra.mxu1 %v1077_v39 }
 0x23c   : > { %1612 = vmatprep.subr.mxu1 %v1076_v40 }
 0x23d   : > { %1613 = vmatpush3.msra.mxu1 %v1076_v40 }
 0x23e   : > { %1614 = vmatprep.subr.mxu1 %v1075_v41 }
 0x23f   : > { %1615 = vmatpush3.msra.mxu1 %v1075_v41 }
 0x2bc   : > { %v1506_v42 = vpop.f32.mrf.mxu1 }
 0x2be   : > { %v807_v43 = vpop.f32.mrf.mxu1 }
 0x2bf   : > { %1581 = vmatprep.mubr.f32.mxu0 %v807_v43 }
 0x2c0   : > { %v1513_v44 = vpop.f32.mrf.mxu1  ;;  %1582 = vmatmul.mubr.f32.vlgmr.msra.gmra.mxu0 %v1506_v42 }
 0x2c2   : > { %v882_v45 = vpop.f32.mrf.mxu1 }
 0x2c3   : > { %1616 = vmatprep.mubr.f32.mxu1 %v882_v45 }
 0x2c4   : > { %1617 = vmatmul.mubr.f32.vlgmr.msra.gmra.mxu1 %v1513_v44 }
 0x2e0   : > { %v1548_v46 = vpop.f32.mrf.mxu1 }
 0x2e2   : > { %v990_v48 = vpop.f32.mrf.mxu1 }
 0x380   : > { %v1583_v47 = vpop.f32.mrf.mxu0 }
 0x381   : > { %v1071_v50 = vadd.f32 %v1583_v47, %v1548_v46 }
 0x382   : > { %v1065_v49 = vpop.f32.mrf.mxu0 }
 0x383   : > { %v1066_v53 = vadd.f32 %v1065_v49, %v990_v48 }
 0x384   : > { %v1618_v51 = vpop.f32.mrf.mxu1 }
 0x385   : > { %v1167_v54 = vadd.f32 %v1618_v51, %v1071_v50 }
 0x386   : > { %v1157_v55 = vpop.f32.mrf.mxu1 }
 0x387   : > { %v1176_v56 = vadd.f32 %v1321_v52, %v1167_v54  ;;  %v1166_v57 = vadd.f32 %v1157_v55, %v1066_v53 }
 0x389   : > { %v1178_v58 = vmax.f32 %v1176_v56, 0.0  ;;  %v1175_v59 = vadd.f32 %v1321_v52, %v1166_v57 }
 0x38b   : > { %1180 = vst [vmem:[%s271_s12 + $0x8] sm:$0xff] %v1178_v58  ;;  %v1177_v60 = vmax.f32 %v1175_v59, 0.0 }
 0x38d   : > { %1179 = vst [vmem:[%s271_s12] sm:$0xff] %v1177_v60 }
 0x38e   : > { %1784 = shalt.err (!%p1781_p3)
}
 0x38f   : > { %s1785_s13 = scalar_lea.hbm %s2077_s11, 256  ;;  %s1789_s9 = scalar_lea.hbm %s2125_s5, 512 }
 0x390   : > { %p1786_p11 = scmp.ne.s32.totalorder %s2077_s11, %s1785_s13  ;;  %p1790_p4 = scmp.lt.s32.totalorder %s2077_s11, %s2125_s5 }
 0x391   : > { %p1791_p6 = scmp.lt.s32.totalorder %s1789_s9, %s1785_s13 }
 0x392   : > { %p1787_p9 = pnand %p1786_p11, %p2142_p2 }
 0x393   : > { %p1792_p8 = por %p1791_p6, %p1790_p4 }
 0x394   : > { %p1788_p1 = pneg %p1787_p9 }
 0x396   : > { %p1793_p5 = pnand %p1792_p8, %p1788_p1 }
 0x398   : > { %1796 = shalt.err (!%p1793_p5)
}
 0x399   : > { %s1848_s6 = smov 128   ;;  %s1849_s7 = smov 8  }
 0x39a   : > { %1629 = dma.vmem_to_hbm [thread:$0]  (%p2142_p2), %s2072_s14, 256, %s2077_s11, %s1182_s17, %s1848_s6, %s1848_s6, %s1849_s7  }
 0x39b PF: > { %s1210_s28 = sand.u32 1, %s1827_s18   ;;  %p2143_p7 = scmp.ne.s32.totalorder %s2132_s25, 0 }
 0x39c   : > { %p2144_p12 = scmp.ge.s32.totalorder %s1839_s21, 2  ;;  %s1211_s16 = scalar_lea.sflag [#allocation4], %s1210_s28 }
 0x39e   : > { %p1643_p13 = pnand %p2144_p12, %p2143_p7 }
 0x3a0   : > { %p1644_p0 = pneg %p1643_p13 }
 0x3a2   : > { %1822 = dma.done.wait (%p1644_p0), %s1211_s16, 256  }
 0x3a3   : > { %1824 = vsyncadd (%p1644_p0), %s1211_s16, 4294967040  ;;  %p19_p10 = scmp.ge.s32.totalorder %s1958_s15, 4   ;;  %s2145_s18 = smov %s1831_s19 }
 0x3a4   : > { %s2146_s19 = smov %s1835_s20  ;;  %s2147_s20 = smov %s1974_s27 }
 0x3a5   : > { %s2148_s21 = smov %s1958_s15  ;;  %21 = sbr.rel (!%p19_p10) target bundleno = 6 (0x6), region = 97 }
 0x3aa   :  { %1216 = vsyncpa [#allocation3], 1 }
 0x3ab   :  { %1218 = vsyncpa [#allocation3 + $0x1], 1 }
 0x3ac   :  { %1219 = vsyncpa [#allocation6], 1 }
 0x3ad   :  { %1220 = vsyncpa [#allocation4], 1 }
 0x3ae   :  { %1222 = vsyncpa [#allocation4 + $0x1], 1 }

</bundles_post_ra>
